<compile_context>
chip_gen: v5e
topology: v5e:2x2
jax: 0.10.0
libtpu: 0.0.40
codegen_flags: <defaults>
</compile_context>

<pallas_src>
from functools import partial

import jax
import jax.numpy as jnp
from jax import lax
from jax.experimental import pallas as pl
from jax.experimental.pallas import tpu as pltpu

EPS = 1e-12  # matches the module's default eps (NOT nn.BatchNorm2d's 1e-5)


def _round_up(a, b):
    return (a + b - 1) // b * b


def _vmem_cap_bytes():
    try:
        return int(pltpu.get_tpu_info().vmem_capacity_bytes)
    except Exception:
        return 64 * 1024 * 1024  # conservative default (v7x per-TensorCore)


def _pick_tm(m):
    # 2048-row tiles on 128-MiB-VMEM parts (v5e/v6e), 1024 on v7x (64 MiB).
    cap = 2048 if _vmem_cap_bytes() >= 100 * 1024 * 1024 else 1024
    if m <= cap:
        return _round_up(max(m, 8), 8)
    for tm in range(cap, 7, -8):  # prefer a divisor of m -> no padded rows / h slice
        if m % tm == 0:
            return tm
    return cap


# ----------------------------------------------------------------------------
# Kernel A: one-pass per-channel sum / sum-of-squares (BN1 batch statistics)
# ----------------------------------------------------------------------------
def _moments_kernel(x_ref, stats_ref):
    # x_ref: (TM, C); stats_ref: (1, 2, C) partials for this row-tile.
    x = x_ref[...]
    stats_ref[0, 0:1, :] = jnp.sum(x, axis=0, keepdims=True)
    stats_ref[0, 1:2, :] = jnp.sum(x * x, axis=0, keepdims=True)


# ----------------------------------------------------------------------------
# Kernel B: BN1 affine + ReLU + 1x1 conv (matmul) + partial BN2 statistics
# ----------------------------------------------------------------------------
def _bn_relu_matmul_stats_kernel(x_ref, scale_ref, bias_ref, w_ref, h_ref, stats_ref,
                                 *, tm, m_rows, compute_dtype):
    # x_ref: (TM, Cin); scale/bias: (1, Cin); w: (Cin, Chid)
    # h_ref: (TM, Chid); stats_ref: (1, 2, Chid) partial sum / sumsq of h.
    y = jnp.maximum(x_ref[...] * scale_ref[...] + bias_ref[...], 0.0)
    if m_rows is not None:  # zero padded rows so they don't pollute BN2 stats
        row = pl.program_id(0) * tm + lax.broadcasted_iota(jnp.int32, (tm, 1), 0)
        y = y * (row < m_rows).astype(y.dtype)
    h = jnp.dot(y.astype(compute_dtype), w_ref[...],
                preferred_element_type=jnp.float32)
    h_ref[...] = h.astype(h_ref.dtype)
    stats_ref[0, 0:1, :] = jnp.sum(h, axis=0, keepdims=True)
    stats_ref[0, 1:2, :] = jnp.sum(h * h, axis=0, keepdims=True)


# ----------------------------------------------------------------------------
# Kernel C: BN2 affine + ReLU (fused prologue), in-kernel spatial padding, and
# the KxK conv as ONE wide MXU matmul followed by per-tap row-shifted VPU adds.
#
#   y_sc : (Hp*Wr + slack, Chid)  zero-padded activation, Wr = round_up(Wp, 8)
#   p_sc : (Hp*Wr + slack, KH*KW*G)  wide product  Y @ W_all
#   conv[r_out, g] = sum_t p_sc[r_out + i_t*Wr + j_t, t*G + g]
# ----------------------------------------------------------------------------
def _bn_relu_conv_kernel(h_ref, scale_ref, bias_ref, wall_ref, o_ref, y_sc, p_sc,
                         *, kh, kw, img_h, img_w, pu, pleft, wr, ho, wo, g,
                         total_rows, rc, rb):
    # 1) Zero the padded buffer (border + alignment columns), then BN2 affine +
    #    ReLU on the un-padded h and scatter image rows to their padded offsets.
    #    (Zeroed every step: scratch state must not depend on program_id under
    #     megacore partitioning of the "parallel" batch axis.)
    y_sc[...] = jnp.zeros_like(y_sc)
    act = jnp.maximum(h_ref[0].astype(jnp.float32) * scale_ref[...] + bias_ref[...], 0.0)
    act = act.astype(y_sc.dtype)
    for r in range(img_h):                              # static unroll over image rows
        dst = (pu + r) * wr + pleft
        y_sc[dst:dst + img_w, :] = act[r * img_w:(r + 1) * img_w, :]

    # 2) One wide MXU matmul for all KH*KW taps (N = KH*KW*G columns), chunked over
    #    rows to bound vreg pressure.  Chunk starts are multiples of 8 (rc % 8 == 0).
    for s in range(0, total_rows, rc):
        size = min(rc, total_rows - s)
        p_sc[s:s + size, :] = jnp.dot(y_sc[s:s + size, :], wall_ref[...],
                                      preferred_element_type=jnp.float32)

    # 3) Per-tap row-shifted accumulation of the G-wide column slices, chunked over
    #    blocks of `rb` output image rows so the accumulator stays vreg-resident.
    #    Tap 0 uses '=' (no zero-init read-modify-write).
    for b in range(ho // rb):
        rows0 = b * rb * wr
        acc = p_sc[rows0:rows0 + rb * wr, 0:g]
        for t in range(1, kh * kw):
            i, j = divmod(t, kw)
            start = rows0 + i * wr + j
            acc = acc + p_sc[start:start + rb * wr, t * g:(t + 1) * g]
        # Drop the discarded wide columns (>= Wo) and store the G new channels.
        # TODO(synk): the store is G-wide on the lane axis; a fully lane-dense
        # (G, H*W) layout needs an in-kernel (rows, G)->(G, rows) transpose.
        o_ref[0, b * rb:(b + 1) * rb, :, :] = acc.reshape(rb, wr, g)[:, 0:wo, :]


# ----------------------------------------------------------------------------
# Forward pass (wrapper)
# ----------------------------------------------------------------------------
def dense_layer_forward(x_nchw, params, kernel_size=(3, 3), stride=(1, 1), eps=EPS,
                        compute_dtype=jnp.float32):
    KH, KW = kernel_size
    assert stride == (1, 1)  # TODO(synk): strided conv path not implemented in-kernel
    assert KW <= 9           # slack rows in kernel C cover shifts j <= 8

    gamma1, beta1 = params["gamma1"], params["beta1"]
    gamma2, beta2 = params["gamma2"], params["beta2"]
    w1_oihw, w2_oihw = params["w1"], params["w2"]          # PyTorch OIHW shapes

    N, C, H, W = x_nchw.shape
    Chid = w1_oihw.shape[0]
    G = w2_oihw.shape[0]
    TG = KH * KW * G

    # ---- weights -------------------------------------------------------------
    w1 = jnp.transpose(w1_oihw[:, :, 0, 0], (1, 0)).astype(compute_dtype)  # (Cin, Chid)
    # Wide conv weight: all taps side by side -> MXU N dim = KH*KW*G (vs G before).
    # wall[c, t*G + g] = w2[g, c, i, j] with t = i*KW + j.
    wall = (jnp.transpose(w2_oihw, (2, 3, 1, 0))                            # (KH,KW,Chid,G)
            .reshape(KH * KW, Chid, G)
            .transpose(1, 0, 2)
            .reshape(Chid, TG)
            .astype(compute_dtype))

    # ---- flattened channels-last view of x for kernels A/B --------------------
    # TODO(synk): this NCHW->channels-last transpose of x is still one XLA pass;
    # fusing it into kernels A/B would need an in-kernel (C, hw)->(hw, C) transpose.
    M = N * H * W
    x_flat = jnp.transpose(x_nchw, (0, 2, 3, 1)).astype(jnp.float32).reshape(M, C)
    TM = _pick_tm(M)
    Mp = _round_up(M, TM)
    grid_m = Mp // TM
    if Mp != M:
        x_flat = jnp.pad(x_flat, ((0, Mp - M), (0, 0)))
    m_rows = M if Mp != M else None

    par = pltpu.CompilerParams(dimension_semantics=("parallel",))

    # --- Kernel A: BN1 batch stats in one pass over x ------------------------
    stats1 = pl.pallas_call(
        _moments_kernel,
        out_shape=jax.ShapeDtypeStruct((grid_m, 2, C), jnp.float32),
        grid=(grid_m,),
        in_specs=[pl.BlockSpec((TM, C), lambda i: (i, 0))],
        out_specs=pl.BlockSpec((1, 2, C), lambda i: (i, 0, 0)),
        compiler_params=par,
    )(x_flat)
    s1 = jnp.sum(stats1, axis=0)                           # (2, C)
    mean1 = s1[0] / M
    # NOTE: one-pass E[x^2]-E[x]^2 with eps=1e-12 can cancel for channels with large
    # mean and tiny variance; acceptable for typical activations (matches review note).
    var1 = jnp.maximum(s1[1] / M - mean1 * mean1, 0.0)     # biased, like PyTorch
    inv1 = gamma1 * lax.rsqrt(var1 + eps)
    scale1 = inv1.reshape(1, C)
    bias1 = (beta1 - mean1 * inv1).reshape(1, C)

    # --- Kernel B: BN1 + ReLU + 1x1 bottleneck conv + BN2 partial stats ------
    h, stats2 = pl.pallas_call(
        partial(_bn_relu_matmul_stats_kernel, tm=TM, m_rows=m_rows,
                compute_dtype=compute_dtype),
        out_shape=(jax.ShapeDtypeStruct((Mp, Chid), compute_dtype),
                   jax.ShapeDtypeStruct((grid_m, 2, Chid), jnp.float32)),
        grid=(grid_m,),
        in_specs=[pl.BlockSpec((TM, C), lambda i: (i, 0)),
                  pl.BlockSpec((1, C), lambda i: (0, 0)),
                  pl.BlockSpec((1, C), lambda i: (0, 0)),
                  pl.BlockSpec((C, Chid), lambda i: (0, 0))],
        out_specs=(pl.BlockSpec((TM, Chid), lambda i: (i, 0)),
                   pl.BlockSpec((1, 2, Chid), lambda i: (i, 0, 0))),
        compiler_params=par,
    )(x_flat, scale1, bias1, w1)

    s2 = jnp.sum(stats2, axis=0)                           # (2, Chid)
    mean2 = s2[0] / M
    var2 = jnp.maximum(s2[1] / M - mean2 * mean2, 0.0)
    inv2 = gamma2 * lax.rsqrt(var2 + eps)
    # NOTE: with bf16 compute_dtype, stats describe the f32 h pre-cast while kernel C
    # normalizes the bf16-stored h (tiny, expected mismatch).
    scale2 = inv2.reshape(1, Chid)
    bias2 = (beta2 - mean2 * inv2).reshape(1, Chid)

    # --- "same size" padding geometry (matches the module's F.pad) -----------
    pad_h = H * (stride[0] - 1) + KH - stride[0]
    pad_w = W * (stride[1] - 1) + KW - stride[1]
    pu = pad_h // 2
    pleft = pad_w // 2
    Hp, Wp = H + pad_h, W + pad_w
    Ho = (Hp - KH) // stride[0] + 1
    Wo = (Wp - KW) // stride[1] + 1
    assert Ho == H and Wo == W

    Wr = _round_up(Wp, 8)      # row pitch: keeps i*Wr tap row-offsets sublane-aligned
    slack = 8                  # covers the +j (< KW <= 9) shift of the last tap row
    total_rows = Hp * Wr + slack

    if Mp != M:
        h = h[:M]
    h3 = h.reshape(N, H * W, Chid)

    # vreg-resident chunk sizes for kernel C
    rb = 1                                                  # output image rows / chunk
    for cand in range(Ho, 0, -1):
        if Ho % cand == 0 and cand * Wr * G * 4 <= 64 * 1024:
            rb = cand
            break
    bytes_per_row = TG * 4 + Chid * jnp.dtype(compute_dtype).itemsize
    rc = min(total_rows, max(64, (192 * 1024 // bytes_per_row) // 8 * 8))  # matmul rows/chunk

    # kernel-C VMEM estimate (double-buffered blocks + scratch); raise the scoped
    # limit only when the 32 MiB default would be exceeded (v7x has 64 MiB physical).
    csz = jnp.dtype(compute_dtype).itemsize
    vmem_c = (2 * H * W * Chid * csz + 2 * Chid * TG * csz + 2 * H * W * G * 4
              + total_rows * Chid * csz + total_rows * TG * 4 + 64 * 1024)
    vmem_limit = int(min(2 * vmem_c, 64 * 1024 * 1024)) if vmem_c > 28 * 1024 * 1024 else None

    # TODO(synk): for N == 1 (or odd N on v7x megacore) add a parallel spatial
    # (row-block with halo) grid axis so both TensorCores have work.
    conv = pl.pallas_call(
        partial(_bn_relu_conv_kernel, kh=KH, kw=KW, img_h=H, img_w=W, pu=pu,
                pleft=pleft, wr=Wr, ho=Ho, wo=Wo, g=G, total_rows=total_rows,
                rc=rc, rb=rb),
        out_shape=jax.ShapeDtypeStruct((N, H, W, G), jnp.float32),
        grid=(N,),
        in_specs=[pl.BlockSpec((1, H * W, Chid), lambda n: (n, 0, 0)),
                  pl.BlockSpec((1, Chid), lambda n: (0, 0)),
                  pl.BlockSpec((1, Chid), lambda n: (0, 0)),
                  pl.BlockSpec((Chid, TG), lambda n: (0, 0))],
        out_specs=pl.BlockSpec((1, H, W, G), lambda n: (n, 0, 0, 0)),
        scratch_shapes=[pltpu.VMEM((total_rows, Chid), compute_dtype),
                        pltpu.VMEM((total_rows, TG), jnp.float32)],
        compiler_params=pltpu.CompilerParams(dimension_semantics=("parallel",),
                                             vmem_limit_bytes=vmem_limit),
    )(h3, scale2, bias2, wall)

    # Channel concat in NCHW: only the small G-channel conv tensor is permuted by
    # XLA; x and the concatenated output are never transposed.
    # TODO(synk): in a full DenseBlock, write each layer's G-channel slice into a
    # preallocated block output via input_output_aliases instead of concatenating.
    conv_nchw = jnp.transpose(conv, (0, 3, 1, 2))
    return jnp.concatenate([x_nchw.astype(jnp.float32), conv_nchw], axis=1)


# ----------------------------------------------------------------------------
# Pure-JAX reference (mirrors the PyTorch module) for the correctness check
# ----------------------------------------------------------------------------
def dense_layer_reference(x, params, kernel_size=(3, 3), stride=(1, 1), eps=EPS):
    KH, KW = kernel_size
    N, C, H, W = x.shape

    def bn(v, g, b):
        m = jnp.mean(v, axis=(0, 2, 3), keepdims=True)
        var = jnp.mean((v - m) ** 2, axis=(0, 2, 3), keepdims=True)
        return (v - m) / jnp.sqrt(var + eps) * g.reshape(1, -1, 1, 1) + b.reshape(1, -1, 1, 1)

    dn = ("NCHW", "OIHW", "NCHW")
    z = jnp.maximum(bn(x, params["gamma1"], params["beta1"]), 0.0)
    z = lax.conv_general_dilated(z, params["w1"], (1, 1), "VALID", dimension_numbers=dn)
    z = jnp.maximum(bn(z, params["gamma2"], params["beta2"]), 0.0)

    pad_h = H * (stride[0] - 1) + KH - stride[0]
    pad_w = W * (stride[1] - 1) + KW - stride[1]
    pu, pb = pad_h // 2, pad_h - pad_h // 2
    pleft, pright = pad_w // 2, pad_w - pad_w // 2
    z = jnp.pad(z, ((0, 0), (0, 0), (pu, pb), (pleft, pright)))
    z = lax.conv_general_dilated(z, params["w2"], stride, "VALID", dimension_numbers=dn)
    return jnp.concatenate([x, z], axis=1)


# ----------------------------------------------------------------------------
if __name__ == "__main__":
    # small shapes consistent with the module
    N, Cin, H, W = 2, 4, 16, 16
    growth_rate = 8
    hidden = 32
    kernel_size = (3, 3)
    stride = (1, 1)

    key = jax.random.PRNGKey(0)
    k_x, k_w1, k_w2, k_g1, k_b1, k_g2, k_b2 = jax.random.split(key, 7)

    x = jax.random.normal(k_x, (N, Cin, H, W), dtype=jnp.float32)

    params = {
        "gamma1": 1.0 + 0.1 * jax.random.normal(k_g1, (Cin,), jnp.float32),
        "beta1": 0.1 * jax.random.normal(k_b1, (Cin,), jnp.float32),
        "w1": 0.1 * jax.random.normal(k_w1, (hidden, Cin, 1, 1), jnp.float32),       # OIHW
        "gamma2": 1.0 + 0.1 * jax.random.normal(k_g2, (hidden,), jnp.float32),
        "beta2": 0.1 * jax.random.normal(k_b2, (hidden,), jnp.float32),
        "w2": 0.1 * jax.random.normal(k_w2, (growth_rate, hidden, *kernel_size), jnp.float32),
    }

    ref = dense_layer_reference(x, params, kernel_size=kernel_size, stride=stride)
    ref = jax.block_until_ready(ref)

    # f32 MXU path — tight check
    out = dense_layer_forward(x, params, kernel_size=kernel_size, stride=stride)
    out = jax.block_until_ready(out)
    assert out.shape == (N, Cin + growth_rate, H, W), out.shape
    assert jnp.allclose(out, ref, rtol=5e-4, atol=5e-4), float(jnp.max(jnp.abs(out - ref)))

    # bf16 MXU path (fp32 accumulation, f32 elementwise) — looser check
    out_bf16 = dense_layer_forward(x, params, kernel_size=kernel_size, stride=stride,
                                   compute_dtype=jnp.bfloat16)
    out_bf16 = jax.block_until_ready(out_bf16)
    assert jnp.allclose(out_bf16, ref, rtol=1e-1, atol=1e-1), \
        float(jnp.max(jnp.abs(out_bf16 - ref)))

    print("KERNEL_OK")
</pallas_src>

<mosaic_0001>
module attributes {stable_mosaic.version = 11 : i64} {
  func.func @_moments_kernel(%arg0: i32, %arg1: memref<512x4xf32, #tpu.memory_space<vmem>>, %arg2: memref<1x2x4xf32, #tpu.memory_space<vmem>>) attributes {dimension_semantics = [#tpu.dimension_semantics<parallel>], iteration_bounds = array<i64: 1>, scalar_prefetch = 0 : i64, scratch_operands = 0 : i64, tpu.core_type = #tpu.core_type<tc>, window_params = [{transform_indices = @transform_0, window_bounds = array<i64: 512, 4>}, {transform_indices = @transform_1, window_bounds = array<i64: 1, 2, 4>}]} {
    %c0 = arith.constant 0 : index
    %c0_0 = arith.constant 0 : index
    %0 = vector.load %arg1[%c0, %c0_0] : memref<512x4xf32, #tpu.memory_space<vmem>>, vector<512x4xf32>
    %cst = arith.constant dense<0.000000e+00> : vector<4xf32>
    %1 = vector.multi_reduction <add>, %0, %cst [0] : vector<512x4xf32> to vector<4xf32>
    %2 = vector.shape_cast %1 : vector<4xf32> to vector<1x4xf32>
    %c0_1 = arith.constant 0 : index
    %c0_2 = arith.constant 0 : index
    %c0_3 = arith.constant 0 : index
    %3 = vector.load %arg2[%c0_1, %c0_2, %c0_3] : memref<1x2x4xf32, #tpu.memory_space<vmem>>, vector<1x1x4xf32>
    %4 = vector.shape_cast %3 : vector<1x1x4xf32> to vector<1x4xf32>
    %5 = vector.shape_cast %2 : vector<1x4xf32> to vector<1x1x4xf32>
    tpu.vector_store %arg2[%c0_1, %c0_2, %c0_3], %5 {strides = array<i32>} : memref<1x2x4xf32, #tpu.memory_space<vmem>>, vector<1x1x4xf32>,
    %6 = arith.mulf %0, %0 : vector<512x4xf32>
    %cst_4 = arith.constant dense<0.000000e+00> : vector<4xf32>
    %7 = vector.multi_reduction <add>, %6, %cst_4 [0] : vector<512x4xf32> to vector<4xf32>
    %8 = vector.shape_cast %7 : vector<4xf32> to vector<1x4xf32>
    %c0_5 = arith.constant 0 : index
    %c1 = arith.constant 1 : index
    %c0_6 = arith.constant 0 : index
    %9 = vector.load %arg2[%c0_5, %c1, %c0_6] : memref<1x2x4xf32, #tpu.memory_space<vmem>>, vector<1x1x4xf32>
    %10 = vector.shape_cast %9 : vector<1x1x4xf32> to vector<1x4xf32>
    %11 = vector.shape_cast %8 : vector<1x4xf32> to vector<1x1x4xf32>
    tpu.vector_store %arg2[%c0_5, %c1, %c0_6], %11 {strides = array<i32>} : memref<1x2x4xf32, #tpu.memory_space<vmem>>, vector<1x1x4xf32>,
    return
  }
  func.func @transform_0(%arg0: i32) -> (i32, i32) {
    %c0_i32 = arith.constant 0 : i32
    %c0_i32_0 = arith.constant 0 : i32
    return %arg0, %c0_i32 : i32, i32
  }
  func.func @transform_1(%arg0: i32) -> (i32, i32, i32) {
    %c0_i32 = arith.constant 0 : i32
    %c0_i32_0 = arith.constant 0 : i32
    %c0_i32_1 = arith.constant 0 : i32
    return %arg0, %c0_i32, %c0_i32_0 : i32, i32, i32
  }
}

</mosaic_0001>

<bundles_post_ra>
// kernel: tpu_custom_call.1
= control target key start
LH: loop header
LB: loop body
LE: loop exit
PB: predicated region body
PF: predicated region fallthrough
CT: control target
= control target key end

     0   :  { %6 = vsyncpa [#allocation3], 0  ;;  %vm73_vm0 = vcmask 31744   ;;  %vm207_vm1 = vcmask 24576   ;;  %s786_s0 = inlined_call_operand.vmem [shape: f32[512,4], index: 0, kind: input, shape index: {}]   ;;  %s787_s1 = inlined_call_operand.hbm [shape: f32[1,2,4], index: 1, kind: output, shape index: {}]  }
   0x1   :  { %v9_v0 = vld [vmem:[%s786_s0] sm:$0xff]  ;;  %v10_v1 = vld [vmem:[%s786_s0 + $0x8] sm:$0xff]  ;;  %v11_v2 = vld [vmem:[%s786_s0 + $0x10] sm:$0xff]  ;;  %s414_s21 = sshll.u32 %s787_s1, 4  ;;  %s415_s21 = int_to_ptr.hbm [resolvable:$true] %s414_s21 }
   0x2   :  { %v74_v3 = vsel %vm73_vm0, %v9_v0, 0.0  ;;  %v75_v4 = vsel %vm73_vm0, %v10_v1, 0.0  ;;  %v12_v5 = vld [vmem:[%s786_s0 + $0x18] sm:$0xff]  ;;  %v77_v7 = vsel %vm73_vm0, %v11_v2, 0.0  ;;  %v13_v9 = vld [vmem:[%s786_s0 + $0x20] sm:$0xff]  ;;  %v14_v12 = vld [vmem:[%s786_s0 + $0x28] sm:$0xff]  ;;  %v209_v21 = vmul.f32 %v9_v0, %v9_v0 }
   0x3   :  { %v76_v6 = vadd.f32 %v75_v4, %v74_v3  ;;  %v79_v8 = vsel %vm73_vm0, %v12_v5, 0.0  ;;  %v81_v11 = vsel %vm73_vm0, %v13_v9, 0.0  ;;  %v83_v14 = vsel %vm73_vm0, %v14_v12, 0.0  ;;  %v15_v15 = vld [vmem:[%s786_s0 + $0x30] sm:$0xff]  ;;  %v16_v18 = vld [vmem:[%s786_s0 + $0x38] sm:$0xff]  ;;  %v17_v24 = vld [vmem:[%s786_s0 + $0x40] sm:$0xff] }
   0x4   :  { %v85_v17 = vsel %vm73_vm0, %v15_v15, 0.0  ;;  %v87_v20 = vsel %vm73_vm0, %v16_v18, 0.0  ;;  %v210_v22 = vmul.f32 %v10_v1, %v10_v1  ;;  %v211_v23 = vmul.f32 %v11_v2, %v11_v2  ;;  %v18_v26 = vld [vmem:[%s786_s0 + $0x48] sm:$0xff]  ;;  %v19_v35 = vld [vmem:[%s786_s0 + $0x50] sm:$0xff]  ;;  %v20_v41 = vld [vmem:[%s786_s0 + $0x58] sm:$0xff] }
   0x5   :  { %v78_v10 = vadd.f32 %v77_v7, %v76_v6  ;;  %v89_v27 = vsel %vm73_vm0, %v17_v24, 0.0  ;;  %v212_v28 = vmul.f32 %v12_v5, %v12_v5  ;;  %v91_v30 = vsel %vm73_vm0, %v18_v26, 0.0  ;;  %v21_v47 = vld [vmem:[%s786_s0 + $0x60] sm:$0xff]  ;;  %v22_v53 = vld [vmem:[%s786_s0 + $0x68] sm:$0xff]  ;;  %v23_v59 = vld [vmem:[%s786_s0 + $0x70] sm:$0xff] }
   0x6   :  { %v213_v31 = vmul.f32 %v13_v9, %v13_v9  ;;  %v273_v32 = vsel %vm73_vm0, %v209_v21, 0.0  ;;  %v274_v33 = vsel %vm73_vm0, %v210_v22, 0.0  ;;  %v276_v34 = vsel %vm73_vm0, %v211_v23, 0.0  ;;  %v24_v1 = vld [vmem:[%s786_s0 + $0x78] sm:$0xff]  ;;  %v25_v7 = vld [vmem:[%s786_s0 + $0x80] sm:$0xff] }
   0x7   :  { %v80_v13 = vadd.f32 %v79_v8, %v78_v10  ;;  %v275_v37 = vadd.f32 %v274_v33, %v273_v32  ;;  %v93_v38 = vsel %vm73_vm0, %v19_v35, 0.0  ;;  %v214_v39 = vmul.f32 %v14_v12, %v14_v12 }
   0x8   :  { %v278_v40 = vsel %vm73_vm0, %v212_v28, 0.0  ;;  %v95_v44 = vsel %vm73_vm0, %v20_v41, 0.0  ;;  %v215_v45 = vmul.f32 %v15_v15, %v15_v15  ;;  %v280_v46 = vsel %vm73_vm0, %v213_v31, 0.0  ;;  %v29_v31 = vld [vmem:[%s786_s0 + $0xa0] sm:$0xff] }
   0x9   :  { %v82_v16 = vadd.f32 %v81_v11, %v80_v13  ;;  %v277_v43 = vadd.f32 %v276_v34, %v275_v37  ;;  %v97_v50 = vsel %vm73_vm0, %v21_v47, 0.0  ;;  %v216_v51 = vmul.f32 %v16_v18, %v16_v18  ;;  %v26_v13 = vld [vmem:[%s786_s0 + $0x88] sm:$0xff] }
   0xa   :  { %v282_v52 = vsel %vm73_vm0, %v214_v39, 0.0  ;;  %v99_v56 = vsel %vm73_vm0, %v22_v53, 0.0  ;;  %v217_v57 = vmul.f32 %v17_v24, %v17_v24  ;;  %v284_v58 = vsel %vm73_vm0, %v215_v45, 0.0  ;;  %v30_v37 = vld [vmem:[%s786_s0 + $0xa8] sm:$0xff] }
   0xb   :  { %v84_v19 = vadd.f32 %v83_v14, %v82_v16  ;;  %v279_v49 = vadd.f32 %v278_v40, %v277_v43  ;;  %v101_v62 = vsel %vm73_vm0, %v23_v59, 0.0  ;;  %v218_v63 = vmul.f32 %v18_v26, %v18_v26  ;;  %v31_v43 = vld [vmem:[%s786_s0 + $0xb0] sm:$0xff] }
   0xc   :  { %v286_v0 = vsel %vm73_vm0, %v216_v51, 0.0  ;;  %v103_v4 = vsel %vm73_vm0, %v24_v1, 0.0  ;;  %v219_v5 = vmul.f32 %v19_v35, %v19_v35  ;;  %v288_v6 = vsel %vm73_vm0, %v217_v57, 0.0 }
   0xd   :  { %v86_v25 = vadd.f32 %v85_v17, %v84_v19  ;;  %v281_v55 = vadd.f32 %v280_v46, %v279_v49  ;;  %v105_v10 = vsel %vm73_vm0, %v25_v7, 0.0  ;;  %v220_v11 = vmul.f32 %v20_v41, %v20_v41  ;;  %v27_v19 = vld [vmem:[%s786_s0 + $0x90] sm:$0xff]  ;;  %v32_v49 = vld [vmem:[%s786_s0 + $0xb8] sm:$0xff] }
   0xe   :  { %v290_v12 = vsel %vm73_vm0, %v218_v63, 0.0  ;;  %v107_v16 = vsel %vm73_vm0, %v26_v13, 0.0  ;;  %v221_v17 = vmul.f32 %v21_v47, %v21_v47  ;;  %v292_v18 = vsel %vm73_vm0, %v219_v5, 0.0 }
   0xf   :  { %v88_v29 = vadd.f32 %v87_v20, %v86_v25  ;;  %v283_v61 = vadd.f32 %v282_v52, %v281_v55  ;;  %v109_v22 = vsel %vm73_vm0, %v27_v19, 0.0  ;;  %v222_v23 = vmul.f32 %v22_v53, %v22_v53  ;;  %v28_v25 = vld [vmem:[%s786_s0 + $0x98] sm:$0xff]  ;;  %v33_v55 = vld [vmem:[%s786_s0 + $0xc0] sm:$0xff] }
  0x10   :  { %v294_v24 = vsel %vm73_vm0, %v220_v11, 0.0  ;;  %v111_v28 = vsel %vm73_vm0, %v28_v25, 0.0  ;;  %v113_v34 = vsel %vm73_vm0, %v29_v31, 0.0  ;;  %v224_v35 = vmul.f32 %v24_v1, %v24_v1 }
  0x11   :  { %v90_v36 = vadd.f32 %v89_v27, %v88_v29  ;;  %v285_v3 = vadd.f32 %v284_v58, %v283_v61  ;;  %v223_v29 = vmul.f32 %v23_v59, %v23_v59  ;;  %v115_v40 = vsel %vm73_vm0, %v30_v37, 0.0  ;;  %v34_v61 = vld [vmem:[%s786_s0 + $0xc8] sm:$0xff] }
  0x12   :  { %v225_v41 = vmul.f32 %v25_v7, %v25_v7  ;;  %v117_v46 = vsel %vm73_vm0, %v31_v43, 0.0  ;;  %v226_v47 = vmul.f32 %v26_v13, %v26_v13  ;;  %v119_v52 = vsel %vm73_vm0, %v32_v49, 0.0 }
  0x13   :  { %v92_v42 = vadd.f32 %v91_v30, %v90_v36  ;;  %v287_v9 = vadd.f32 %v286_v0, %v285_v3  ;;  %v296_v30 = vsel %vm73_vm0, %v221_v17, 0.0  ;;  %v298_v36 = vsel %vm73_vm0, %v222_v23, 0.0  ;;  %v35_v3 = vld [vmem:[%s786_s0 + $0xd0] sm:$0xff] }
  0x14   :  { %v227_v53 = vmul.f32 %v27_v19, %v27_v19  ;;  %v121_v58 = vsel %vm73_vm0, %v33_v55, 0.0  ;;  %v228_v59 = vmul.f32 %v28_v25, %v28_v25  ;;  %v123_v0 = vsel %vm73_vm0, %v34_v61, 0.0 }
  0x15   :  { %v94_v48 = vadd.f32 %v93_v38, %v92_v42  ;;  %v289_v15 = vadd.f32 %v288_v6, %v287_v9  ;;  %v300_v42 = vsel %vm73_vm0, %v223_v29, 0.0  ;;  %v229_v1 = vmul.f32 %v29_v31, %v29_v31  ;;  %v36_v9 = vld [vmem:[%s786_s0 + $0xd8] sm:$0xff] }
  0x16   :  { %v125_v6 = vsel %vm73_vm0, %v35_v3, 0.0  ;;  %v230_v7 = vmul.f32 %v30_v37, %v30_v37  ;;  %v231_v13 = vmul.f32 %v31_v43, %v31_v43  ;;  %v232_v19 = vmul.f32 %v32_v49, %v32_v49 }
  0x17   :  { %v96_v54 = vadd.f32 %v95_v44, %v94_v48  ;;  %v291_v21 = vadd.f32 %v290_v12, %v289_v15  ;;  %v302_v48 = vsel %vm73_vm0, %v224_v35, 0.0  ;;  %v127_v12 = vsel %vm73_vm0, %v36_v9, 0.0  ;;  %v37_v15 = vld [vmem:[%s786_s0 + $0xe0] sm:$0xff] }
  0x18   :  { %v233_v25 = vmul.f32 %v33_v55, %v33_v55  ;;  %v234_v31 = vmul.f32 %v34_v61, %v34_v61  ;;  %v235_v37 = vmul.f32 %v35_v3, %v35_v3  ;;  %v236_v43 = vmul.f32 %v36_v9, %v36_v9 }
  0x19   :  { %v98_v60 = vadd.f32 %v97_v50, %v96_v54  ;;  %v293_v27 = vadd.f32 %v292_v18, %v291_v21  ;;  %v304_v54 = vsel %vm73_vm0, %v225_v41, 0.0  ;;  %v129_v18 = vsel %vm73_vm0, %v37_v15, 0.0  ;;  %v38_v21 = vld [vmem:[%s786_s0 + $0xe8] sm:$0xff] }
  0x1a   :  { %v237_v49 = vmul.f32 %v37_v15, %v37_v15  ;;  %v238_v55 = vmul.f32 %v38_v21, %v38_v21 }
  0x1b   :  { %v100_v2 = vadd.f32 %v99_v56, %v98_v60  ;;  %v295_v33 = vadd.f32 %v294_v24, %v293_v27  ;;  %v306_v60 = vsel %vm73_vm0, %v226_v47, 0.0  ;;  %v131_v24 = vsel %vm73_vm0, %v38_v21, 0.0  ;;  %v39_v27 = vld [vmem:[%s786_s0 + $0xf0] sm:$0xff] }
  0x1c   :  { %v239_v61 = vmul.f32 %v39_v27, %v39_v27 }
  0x1d   :  { %v102_v8 = vadd.f32 %v101_v62, %v100_v2  ;;  %v297_v39 = vadd.f32 %v296_v30, %v295_v33  ;;  %v308_v2 = vsel %vm73_vm0, %v227_v53, 0.0  ;;  %v133_v30 = vsel %vm73_vm0, %v39_v27, 0.0  ;;  %v40_v33 = vld [vmem:[%s786_s0 + $0xf8] sm:$0xff] }
  0x1e   :  { %v240_v3 = vmul.f32 %v40_v33, %v40_v33 }
  0x1f   :  { %v104_v14 = vadd.f32 %v103_v4, %v102_v8  ;;  %v299_v45 = vadd.f32 %v298_v36, %v297_v39  ;;  %v310_v8 = vsel %vm73_vm0, %v228_v59, 0.0  ;;  %v135_v36 = vsel %vm73_vm0, %v40_v33, 0.0  ;;  %v41_v39 = vld [vmem:[%s786_s0 + $0x100] sm:$0xff] }
  0x20   :  { %v241_v9 = vmul.f32 %v41_v39, %v41_v39 }
  0x21   :  { %v106_v20 = vadd.f32 %v105_v10, %v104_v14  ;;  %v301_v51 = vadd.f32 %v300_v42, %v299_v45  ;;  %v312_v14 = vsel %vm73_vm0, %v229_v1, 0.0  ;;  %v137_v42 = vsel %vm73_vm0, %v41_v39, 0.0  ;;  %v42_v45 = vld [vmem:[%s786_s0 + $0x108] sm:$0xff] }
  0x22   :  { %v242_v15 = vmul.f32 %v42_v45, %v42_v45 }
  0x23   :  { %v108_v26 = vadd.f32 %v107_v16, %v106_v20  ;;  %v303_v57 = vadd.f32 %v302_v48, %v301_v51  ;;  %v314_v20 = vsel %vm73_vm0, %v230_v7, 0.0  ;;  %v139_v48 = vsel %vm73_vm0, %v42_v45, 0.0  ;;  %v43_v51 = vld [vmem:[%s786_s0 + $0x110] sm:$0xff] }
  0x24   :  { %v243_v21 = vmul.f32 %v43_v51, %v43_v51 }
  0x25   :  { %v110_v32 = vadd.f32 %v109_v22, %v108_v26  ;;  %v305_v63 = vadd.f32 %v304_v54, %v303_v57  ;;  %v316_v26 = vsel %vm73_vm0, %v231_v13, 0.0  ;;  %v141_v54 = vsel %vm73_vm0, %v43_v51, 0.0  ;;  %v44_v57 = vld [vmem:[%s786_s0 + $0x118] sm:$0xff] }
  0x26   :  { %v244_v27 = vmul.f32 %v44_v57, %v44_v57 }
  0x27   :  { %v112_v38 = vadd.f32 %v111_v28, %v110_v32  ;;  %v307_v5 = vadd.f32 %v306_v60, %v305_v63  ;;  %v318_v32 = vsel %vm73_vm0, %v232_v19, 0.0  ;;  %v143_v60 = vsel %vm73_vm0, %v44_v57, 0.0  ;;  %v45_v63 = vld [vmem:[%s786_s0 + $0x120] sm:$0xff] }
  0x28   :  { %v245_v33 = vmul.f32 %v45_v63, %v45_v63 }
  0x29   :  { %v114_v44 = vadd.f32 %v113_v34, %v112_v38  ;;  %v309_v11 = vadd.f32 %v308_v2, %v307_v5  ;;  %v320_v38 = vsel %vm73_vm0, %v233_v25, 0.0  ;;  %v145_v2 = vsel %vm73_vm0, %v45_v63, 0.0  ;;  %v46_v5 = vld [vmem:[%s786_s0 + $0x128] sm:$0xff] }
  0x2a   :  { %v246_v39 = vmul.f32 %v46_v5, %v46_v5 }
  0x2b   :  { %v116_v50 = vadd.f32 %v115_v40, %v114_v44  ;;  %v311_v17 = vadd.f32 %v310_v8, %v309_v11  ;;  %v322_v44 = vsel %vm73_vm0, %v234_v31, 0.0  ;;  %v147_v8 = vsel %vm73_vm0, %v46_v5, 0.0  ;;  %v47_v11 = vld [vmem:[%s786_s0 + $0x130] sm:$0xff] }
  0x2c   :  { %v247_v45 = vmul.f32 %v47_v11, %v47_v11 }
  0x2d   :  { %v118_v56 = vadd.f32 %v117_v46, %v116_v50  ;;  %v313_v23 = vadd.f32 %v312_v14, %v311_v17  ;;  %v324_v50 = vsel %vm73_vm0, %v235_v37, 0.0  ;;  %v149_v14 = vsel %vm73_vm0, %v47_v11, 0.0  ;;  %v48_v17 = vld [vmem:[%s786_s0 + $0x138] sm:$0xff] }
  0x2e   :  { %v248_v51 = vmul.f32 %v48_v17, %v48_v17 }
  0x2f   :  { %v120_v62 = vadd.f32 %v119_v52, %v118_v56  ;;  %v315_v29 = vadd.f32 %v314_v20, %v313_v23  ;;  %v326_v56 = vsel %vm73_vm0, %v236_v43, 0.0  ;;  %v151_v20 = vsel %vm73_vm0, %v48_v17, 0.0  ;;  %v49_v23 = vld [vmem:[%s786_s0 + $0x140] sm:$0xff] }
  0x30   :  { %v249_v57 = vmul.f32 %v49_v23, %v49_v23 }
  0x31   :  { %v122_v4 = vadd.f32 %v121_v58, %v120_v62  ;;  %v317_v35 = vadd.f32 %v316_v26, %v315_v29  ;;  %v328_v62 = vsel %vm73_vm0, %v237_v49, 0.0  ;;  %v153_v26 = vsel %vm73_vm0, %v49_v23, 0.0  ;;  %v50_v29 = vld [vmem:[%s786_s0 + $0x148] sm:$0xff] }
  0x32   :  { %v250_v63 = vmul.f32 %v50_v29, %v50_v29 }
  0x33   :  { %v124_v10 = vadd.f32 %v123_v0, %v122_v4  ;;  %v319_v41 = vadd.f32 %v318_v32, %v317_v35  ;;  %v330_v4 = vsel %vm73_vm0, %v238_v55, 0.0  ;;  %v155_v32 = vsel %vm73_vm0, %v50_v29, 0.0  ;;  %v51_v35 = vld [vmem:[%s786_s0 + $0x150] sm:$0xff] }
  0x34   :  { %v251_v5 = vmul.f32 %v51_v35, %v51_v35 }
  0x35   :  { %v126_v16 = vadd.f32 %v125_v6, %v124_v10  ;;  %v321_v47 = vadd.f32 %v320_v38, %v319_v41  ;;  %v332_v10 = vsel %vm73_vm0, %v239_v61, 0.0  ;;  %v157_v38 = vsel %vm73_vm0, %v51_v35, 0.0  ;;  %v52_v41 = vld [vmem:[%s786_s0 + $0x158] sm:$0xff] }
  0x36   :  { %v252_v11 = vmul.f32 %v52_v41, %v52_v41 }
  0x37   :  { %v128_v22 = vadd.f32 %v127_v12, %v126_v16  ;;  %v323_v53 = vadd.f32 %v322_v44, %v321_v47  ;;  %v334_v16 = vsel %vm73_vm0, %v240_v3, 0.0  ;;  %v159_v44 = vsel %vm73_vm0, %v52_v41, 0.0  ;;  %v53_v47 = vld [vmem:[%s786_s0 + $0x160] sm:$0xff] }
  0x38   :  { %v253_v17 = vmul.f32 %v53_v47, %v53_v47 }
  0x39   :  { %v130_v28 = vadd.f32 %v129_v18, %v128_v22  ;;  %v325_v59 = vadd.f32 %v324_v50, %v323_v53  ;;  %v336_v22 = vsel %vm73_vm0, %v241_v9, 0.0  ;;  %v161_v50 = vsel %vm73_vm0, %v53_v47, 0.0  ;;  %v54_v53 = vld [vmem:[%s786_s0 + $0x168] sm:$0xff] }
  0x3a   :  { %v254_v23 = vmul.f32 %v54_v53, %v54_v53 }
  0x3b   :  { %v132_v34 = vadd.f32 %v131_v24, %v130_v28  ;;  %v327_v1 = vadd.f32 %v326_v56, %v325_v59  ;;  %v338_v28 = vsel %vm73_vm0, %v242_v15, 0.0  ;;  %v163_v56 = vsel %vm73_vm0, %v54_v53, 0.0  ;;  %v55_v59 = vld [vmem:[%s786_s0 + $0x170] sm:$0xff] }
  0x3c   :  { %v255_v29 = vmul.f32 %v55_v59, %v55_v59 }
  0x3d   :  { %v134_v40 = vadd.f32 %v133_v30, %v132_v34  ;;  %v329_v7 = vadd.f32 %v328_v62, %v327_v1  ;;  %v340_v34 = vsel %vm73_vm0, %v243_v21, 0.0  ;;  %v165_v62 = vsel %vm73_vm0, %v55_v59, 0.0  ;;  %v56_v1 = vld [vmem:[%s786_s0 + $0x178] sm:$0xff] }
  0x3e   :  { %v256_v35 = vmul.f32 %v56_v1, %v56_v1 }
  0x3f   :  { %v136_v46 = vadd.f32 %v135_v36, %v134_v40  ;;  %v331_v13 = vadd.f32 %v330_v4, %v329_v7  ;;  %v342_v40 = vsel %vm73_vm0, %v244_v27, 0.0  ;;  %v167_v4 = vsel %vm73_vm0, %v56_v1, 0.0  ;;  %v57_v7 = vld [vmem:[%s786_s0 + $0x180] sm:$0xff] }
  0x40   :  { %v257_v41 = vmul.f32 %v57_v7, %v57_v7 }
  0x41   :  { %v138_v52 = vadd.f32 %v137_v42, %v136_v46  ;;  %v333_v19 = vadd.f32 %v332_v10, %v331_v13  ;;  %v344_v46 = vsel %vm73_vm0, %v245_v33, 0.0  ;;  %v169_v10 = vsel %vm73_vm0, %v57_v7, 0.0  ;;  %v58_v13 = vld [vmem:[%s786_s0 + $0x188] sm:$0xff] }
  0x42   :  { %v258_v47 = vmul.f32 %v58_v13, %v58_v13 }
  0x43   :  { %v140_v58 = vadd.f32 %v139_v48, %v138_v52  ;;  %v335_v25 = vadd.f32 %v334_v16, %v333_v19  ;;  %v346_v52 = vsel %vm73_vm0, %v246_v39, 0.0  ;;  %v171_v16 = vsel %vm73_vm0, %v58_v13, 0.0  ;;  %v59_v19 = vld [vmem:[%s786_s0 + $0x190] sm:$0xff] }
  0x44   :  { %v259_v53 = vmul.f32 %v59_v19, %v59_v19 }
  0x45   :  { %v142_v0 = vadd.f32 %v141_v54, %v140_v58  ;;  %v337_v31 = vadd.f32 %v336_v22, %v335_v25  ;;  %v348_v58 = vsel %vm73_vm0, %v247_v45, 0.0  ;;  %v173_v22 = vsel %vm73_vm0, %v59_v19, 0.0  ;;  %v60_v25 = vld [vmem:[%s786_s0 + $0x198] sm:$0xff] }
  0x46   :  { %v260_v59 = vmul.f32 %v60_v25, %v60_v25 }
  0x47   :  { %v144_v6 = vadd.f32 %v143_v60, %v142_v0  ;;  %v339_v37 = vadd.f32 %v338_v28, %v337_v31  ;;  %v350_v0 = vsel %vm73_vm0, %v248_v51, 0.0  ;;  %v175_v28 = vsel %vm73_vm0, %v60_v25, 0.0  ;;  %v61_v31 = vld [vmem:[%s786_s0 + $0x1a0] sm:$0xff] }
  0x48   :  { %v261_v1 = vmul.f32 %v61_v31, %v61_v31 }
  0x49   :  { %v146_v12 = vadd.f32 %v145_v2, %v144_v6  ;;  %v341_v43 = vadd.f32 %v340_v34, %v339_v37  ;;  %v352_v6 = vsel %vm73_vm0, %v249_v57, 0.0  ;;  %v177_v34 = vsel %vm73_vm0, %v61_v31, 0.0  ;;  %v62_v37 = vld [vmem:[%s786_s0 + $0x1a8] sm:$0xff] }
  0x4a   :  { %v262_v7 = vmul.f32 %v62_v37, %v62_v37 }
  0x4b   :  { %v148_v18 = vadd.f32 %v147_v8, %v146_v12  ;;  %v343_v49 = vadd.f32 %v342_v40, %v341_v43  ;;  %v354_v12 = vsel %vm73_vm0, %v250_v63, 0.0  ;;  %v179_v40 = vsel %vm73_vm0, %v62_v37, 0.0  ;;  %v63_v43 = vld [vmem:[%s786_s0 + $0x1b0] sm:$0xff] }
  0x4c   :  { %v263_v13 = vmul.f32 %v63_v43, %v63_v43 }
  0x4d   :  { %v150_v24 = vadd.f32 %v149_v14, %v148_v18  ;;  %v345_v55 = vadd.f32 %v344_v46, %v343_v49  ;;  %v356_v18 = vsel %vm73_vm0, %v251_v5, 0.0  ;;  %v181_v46 = vsel %vm73_vm0, %v63_v43, 0.0  ;;  %v64_v49 = vld [vmem:[%s786_s0 + $0x1b8] sm:$0xff] }
  0x4e   :  { %v264_v19 = vmul.f32 %v64_v49, %v64_v49 }
  0x4f   :  { %v152_v30 = vadd.f32 %v151_v20, %v150_v24  ;;  %v347_v61 = vadd.f32 %v346_v52, %v345_v55  ;;  %v358_v24 = vsel %vm73_vm0, %v252_v11, 0.0  ;;  %v183_v52 = vsel %vm73_vm0, %v64_v49, 0.0  ;;  %v65_v55 = vld [vmem:[%s786_s0 + $0x1c0] sm:$0xff] }
  0x50   :  { %v265_v25 = vmul.f32 %v65_v55, %v65_v55 }
  0x51   :  { %v154_v36 = vadd.f32 %v153_v26, %v152_v30  ;;  %v349_v3 = vadd.f32 %v348_v58, %v347_v61  ;;  %v360_v30 = vsel %vm73_vm0, %v253_v17, 0.0  ;;  %v185_v58 = vsel %vm73_vm0, %v65_v55, 0.0  ;;  %v66_v61 = vld [vmem:[%s786_s0 + $0x1c8] sm:$0xff] }
  0x52   :  { %v266_v31 = vmul.f32 %v66_v61, %v66_v61 }
  0x53   :  { %v156_v42 = vadd.f32 %v155_v32, %v154_v36  ;;  %v351_v9 = vadd.f32 %v350_v0, %v349_v3  ;;  %v362_v36 = vsel %vm73_vm0, %v254_v23, 0.0  ;;  %v187_v0 = vsel %vm73_vm0, %v66_v61, 0.0  ;;  %v67_v3 = vld [vmem:[%s786_s0 + $0x1d0] sm:$0xff] }
  0x54   :  { %v267_v37 = vmul.f32 %v67_v3, %v67_v3 }
  0x55   :  { %v158_v48 = vadd.f32 %v157_v38, %v156_v42  ;;  %v353_v15 = vadd.f32 %v352_v6, %v351_v9  ;;  %v364_v42 = vsel %vm73_vm0, %v255_v29, 0.0  ;;  %v189_v6 = vsel %vm73_vm0, %v67_v3, 0.0  ;;  %v68_v9 = vld [vmem:[%s786_s0 + $0x1d8] sm:$0xff] }
  0x57   :  { %v160_v54 = vadd.f32 %v159_v44, %v158_v48  ;;  %v355_v21 = vadd.f32 %v354_v12, %v353_v15  ;;  %v366_v48 = vsel %vm73_vm0, %v256_v35, 0.0  ;;  %v191_v12 = vsel %vm73_vm0, %v68_v9, 0.0  ;;  %v69_v15 = vld [vmem:[%s786_s0 + $0x1e0] sm:$0xff] }
  0x59   :  { %v162_v60 = vadd.f32 %v161_v50, %v160_v54  ;;  %v357_v27 = vadd.f32 %v356_v18, %v355_v21  ;;  %v368_v54 = vsel %vm73_vm0, %v257_v41, 0.0  ;;  %v193_v18 = vsel %vm73_vm0, %v69_v15, 0.0  ;;  %v70_v21 = vld [vmem:[%s786_s0 + $0x1e8] sm:$0xff] }
  0x5a   :  { %v268_v41 = vmul.f32 %v68_v9, %v68_v9  ;;  %v270_v49 = vmul.f32 %v70_v21, %v70_v21 }
  0x5b   :  { %v164_v2 = vadd.f32 %v163_v56, %v162_v60  ;;  %v359_v33 = vadd.f32 %v358_v24, %v357_v27  ;;  %v370_v60 = vsel %vm73_vm0, %v258_v47, 0.0  ;;  %v195_v24 = vsel %vm73_vm0, %v70_v21, 0.0  ;;  %v71_v27 = vld [vmem:[%s786_s0 + $0x1f0] sm:$0xff] }
  0x5d   :  { %v166_v8 = vadd.f32 %v165_v62, %v164_v2  ;;  %v361_v39 = vadd.f32 %v360_v30, %v359_v33  ;;  %v372_v2 = vsel %vm73_vm0, %v259_v53, 0.0  ;;  %v197_v30 = vsel %vm73_vm0, %v71_v27, 0.0  ;;  %v72_v33 = vld [vmem:[%s786_s0 + $0x1f8] sm:$0xff]  ;;  %s450_s0 = smov [#allocation2]  }
  0x5e   :  { %v271_v53 = vmul.f32 %v71_v27, %v71_v27  ;;  %s412_s18 = sshll.u32 %s450_s0, 4  ;;  %s413_s18 = int_to_ptr.vmem [resolvable:$true] %s412_s18 }
  0x5f   :  { %v168_v14 = vadd.f32 %v167_v4, %v166_v8  ;;  %v363_v45 = vadd.f32 %v362_v36, %v361_v39  ;;  %v374_v8 = vsel %vm73_vm0, %v260_v59, 0.0  ;;  %v199_v36 = vsel %vm73_vm0, %v72_v33, 0.0 }
  0x60   :  { %v396_v61 = vsel %vm73_vm0, %v271_v53, 0.0 }
  0x61   :  { %v170_v20 = vadd.f32 %v169_v10, %v168_v14  ;;  %v365_v51 = vadd.f32 %v364_v42, %v363_v45  ;;  %v376_v14 = vsel %vm73_vm0, %v261_v1, 0.0  ;;  %v386_v42 = vsel %vm73_vm0, %v266_v31, 0.0 }
  0x62   :  { %v269_v45 = vmul.f32 %v69_v15, %v69_v15 }
  0x63   :  { %v172_v26 = vadd.f32 %v171_v16, %v170_v20  ;;  %v367_v57 = vadd.f32 %v366_v48, %v365_v51  ;;  %v378_v20 = vsel %vm73_vm0, %v262_v7, 0.0 }
  0x65   :  { %v174_v32 = vadd.f32 %v173_v22, %v172_v26  ;;  %v369_v63 = vadd.f32 %v368_v54, %v367_v57  ;;  %v380_v26 = vsel %vm73_vm0, %v263_v13, 0.0  ;;  %v392_v54 = vsel %vm73_vm0, %v269_v45, 0.0 }
  0x66   :  { %v272_v57 = vmul.f32 %v72_v33, %v72_v33 }
  0x67   :  { %v176_v38 = vadd.f32 %v175_v28, %v174_v32  ;;  %v371_v5 = vadd.f32 %v370_v60, %v369_v63  ;;  %v382_v32 = vsel %vm73_vm0, %v264_v19, 0.0 }
  0x69   :  { %v178_v44 = vadd.f32 %v177_v34, %v176_v38  ;;  %v373_v11 = vadd.f32 %v372_v2, %v371_v5  ;;  %v384_v38 = vsel %vm73_vm0, %v265_v25, 0.0 }
  0x6b   :  { %v180_v50 = vadd.f32 %v179_v40, %v178_v44  ;;  %v375_v17 = vadd.f32 %v374_v8, %v373_v11 }
  0x6d   :  { %v182_v56 = vadd.f32 %v181_v46, %v180_v50  ;;  %v377_v23 = vadd.f32 %v376_v14, %v375_v17  ;;  %v388_v46 = vsel %vm73_vm0, %v267_v37, 0.0  ;;  %v390_v50 = vsel %vm73_vm0, %v268_v41, 0.0 }
  0x6f   :  { %v184_v62 = vadd.f32 %v183_v52, %v182_v56  ;;  %v379_v29 = vadd.f32 %v378_v20, %v377_v23 }
  0x71   :  { %v186_v4 = vadd.f32 %v185_v58, %v184_v62  ;;  %v381_v35 = vadd.f32 %v380_v26, %v379_v29  ;;  %v394_v58 = vsel %vm73_vm0, %v270_v49, 0.0 }
  0x73   :  { %v188_v10 = vadd.f32 %v187_v0, %v186_v4  ;;  %v383_v40 = vadd.f32 %v382_v32, %v381_v35  ;;  %v398_v0 = vsel %vm73_vm0, %v272_v57, 0.0 }
  0x75   :  { %v190_v16 = vadd.f32 %v189_v6, %v188_v10  ;;  %v385_v44 = vadd.f32 %v384_v38, %v383_v40 }
  0x77   :  { %v192_v22 = vadd.f32 %v191_v12, %v190_v16  ;;  %v387_v48 = vadd.f32 %v386_v42, %v385_v44 }
  0x79   :  { %v194_v28 = vadd.f32 %v193_v18, %v192_v22  ;;  %v389_v52 = vadd.f32 %v388_v46, %v387_v48 }
  0x7b   :  { %v196_v34 = vadd.f32 %v195_v24, %v194_v28  ;;  %v391_v56 = vadd.f32 %v390_v50, %v389_v52 }
  0x7d   :  { %v198_v39 = vadd.f32 %v197_v30, %v196_v34  ;;  %v393_v60 = vadd.f32 %v392_v54, %v391_v56 }
  0x7f   :  { %v200_v43 = vadd.f32 %v199_v36, %v198_v39  ;;  %v395_v63 = vadd.f32 %v394_v58, %v393_v60 }
  0x81   :  { %v201_v47 = vrot.slane %v200_v43, 4  ;;  %v397_v2 = vadd.f32 %v396_v61, %v395_v63 }
  0x83   :  { %v202_v51 = vadd.f32 %v201_v47, %v200_v43  ;;  %v399_v3 = vadd.f32 %v398_v0, %v397_v2 }
  0x85   :  { %v203_v55 = vrot.slane %v202_v51, 2  ;;  %v400_v4 = vrot.slane %v399_v3, 4 }
  0x87   :  { %v204_v59 = vadd.f32 %v203_v55, %v202_v51  ;;  %v401_v5 = vadd.f32 %v400_v4, %v399_v3 }
  0x89   :  { %v205_v62 = vrot.slane %v204_v59, 1  ;;  %v402_v6 = vrot.slane %v401_v5, 2 }
  0x8b   :  { %v206_v1 = vadd.f32 %v205_v62, %v204_v59  ;;  %v403_v7 = vadd.f32 %v402_v6, %v401_v5 }
  0x8d   :  { %208 = vst.msk [vmem:[#allocation2] sm:$0x1] %vm207_vm1, %v206_v1  ;;  %v404_v8 = vrot.slane %v403_v7, 1 }
  0x8f   :  { %v405_v9 = vadd.f32 %v404_v8, %v403_v7 }
  0x91   :  { %406 = vst.msk [vmem:[#allocation2 + $0x1] sm:$0x1] %vm207_vm1, %v405_v9 }
  0x92   :  { %417 = dma.vmem_to_hbm [thread:$0]  %s413_s18, 32, %s415_s21, [#allocation3]  }
  0x93   :  { %448 = dma.done.wait [#allocation3], 32  }
  0x94   :  { %449 = vsyncadd [#allocation3], 4294967264 }
  0x95   :  { %422 = vsyncpa [#allocation3], 1 }

</bundles_post_ra>
